<compile_context>
chip_gen: v5e
topology: v5e:2x2
jax: 0.10.0
libtpu: 0.0.40
codegen_flags: <defaults>
</compile_context>

<pallas_src>
import functools
from itertools import combinations

import numpy as np
import jax
import jax.numpy as jnp
from jax.experimental import pallas as pl
from jax.experimental.pallas import tpu as pltpu

MARGIN = 3.0  # `margin = 3` in the reference script


# ------------------------- triplet selector (host glue) -----------------------
def all_triplets(labels):
    labels = np.asarray(labels)
    triplets = []
    for label in sorted(set(labels.tolist())):
        label_mask = labels == label
        label_indices = np.where(label_mask)[0]
        if len(label_indices) < 2:
            continue
        negative_indices = np.where(~label_mask)[0]
        for a, p in combinations(label_indices, 2):
            for n in negative_indices:
                triplets.append([a, p, n])
    return np.asarray(triplets, dtype=np.int32)


def _round_up(x, m):
    return ((x + m - 1) // m) * m


# ----------------- kernel 1: pairwise squared distance matrix -----------------
def _pairwise_dist_kernel(er_ref, ec_ref, sqr_ref, sqc_ref, dist_ref, acc_ref):
    k = pl.program_id(2)

    @pl.when(k == 0)
    def _init():
        acc_ref[...] = jnp.zeros_like(acc_ref)

    # bf16 x bf16 -> f32 Gram tile on the MXU; contract over the K tile.
    acc_ref[...] += jax.lax.dot_general(
        er_ref[...], ec_ref[...],
        dimension_numbers=(((1,), (1,)), ((), ())),
        preferred_element_type=jnp.float32,
    )

    @pl.when(k == pl.num_programs(2) - 1)
    def _finalize():
        # d(i, j) = |e_i|^2 + |e_j|^2 - 2 * G[i, j]
        dist_ref[...] = sqr_ref[...] + sqc_ref[...] - 2.0 * acc_ref[...]


# ----------------- kernel 2: dense vectorized triplet reduction ---------------
def _loss_reduce_kernel(diff_ref, out_ref, acc_ref, *, margin, inv_t):
    step = pl.program_id(1)

    @pl.when(step == 0)
    def _init():
        acc_ref[...] = jnp.zeros_like(acc_ref)

    # Full-vreg elementwise work: relu(d_ap - d_an + margin), accumulated into a
    # dense (BLOCK_ROWS, 1024) partial-sum tile (no sub-vreg rows, no scalar RMW).
    acc_ref[...] += jnp.maximum(diff_ref[...] + margin, 0.0)

    @pl.when(step == pl.num_programs(1) - 1)
    def _finalize():
        partial_mean = jnp.sum(acc_ref[...]) * inv_t   # fold 1/T into the epilogue
        out_ref[...] = jnp.broadcast_to(partial_mean, out_ref.shape)


# ----------------------------------- wrapper ----------------------------------
def online_triplet_loss(embeddings, target, margin=MARGIN):
    """Returns (losses.mean(), len(triplets)) — mirrors OnlineTripletLoss.forward."""
    triplets_np = all_triplets(np.asarray(target))
    num_t = int(triplets_np.shape[0])
    if num_t == 0:  # guard: no valid triplets -> zero loss
        return jnp.float32(0.0), 0

    N, D = embeddings.shape

    # ------------------------- kernel 1 launch geometry -----------------------
    TM = TN = 256                     # fills the 2x256x256 MXU on v6e/v7x
    Np = _round_up(N, TM)
    Dp = _round_up(D, 128)
    if Dp <= 2048:
        TK = Dp                       # single K step
    else:
        TK = 2048                     # K-tiled: bounded VMEM even on v7x (64 MiB)
        Dp = _round_up(Dp, TK)

    # Zero-pad embeddings; padded rows are never gathered by any triplet.
    e_f32 = jnp.zeros((Np, Dp), jnp.float32).at[:N, :D].set(
        embeddings.astype(jnp.float32))
    e_bf16 = e_f32.astype(jnp.bfloat16)          # bf16 MXU operands
    sq = jnp.sum(e_f32 * e_f32, axis=1)          # squared norms stay in f32
    sq_row = sq[:, None]                         # (Np, 1)
    sq_col = sq[None, :]                         # (1, Np)

    dist = pl.pallas_call(
        _pairwise_dist_kernel,
        out_shape=jax.ShapeDtypeStruct((Np, Np), jnp.float32),
        grid=(Np // TM, Np // TN, Dp // TK),
        in_specs=[
            pl.BlockSpec((TM, TK), lambda i, j, k: (i, k)),   # row tile of E
            pl.BlockSpec((TN, TK), lambda i, j, k: (j, k)),   # col tile of E
            pl.BlockSpec((TM, 1), lambda i, j, k: (i, 0)),    # |e_i|^2
            pl.BlockSpec((1, TN), lambda i, j, k: (0, j)),    # |e_j|^2
        ],
        out_specs=pl.BlockSpec((TM, TN), lambda i, j, k: (i, j)),
        scratch_shapes=[pltpu.VMEM((TM, TN), jnp.float32)],
        compiler_params=pltpu.CompilerParams(
            dimension_semantics=("parallel", "parallel", "arbitrary")),
    )(e_bf16, e_bf16, sq_row, sq_col)

    # Per-triplet lookups; the subtraction fuses into the XLA gather epilogue so
    # kernel 2 sees a single pre-subtracted stream (half the HBM traffic).
    trip = jnp.asarray(triplets_np, dtype=jnp.int32)
    a_i, p_i, n_i = trip[:, 0], trip[:, 1], trip[:, 2]
    diff = dist[a_i, p_i] - dist[a_i, n_i]       # (T,)

    # ------------------------- kernel 2 launch geometry -----------------------
    LANES = 1024
    NUM_CORES = 2                                # v7x two-TC shard; no-op on 1-TC chips
    rows_needed = -(-num_t // LANES)
    BLOCK_ROWS = 256 if rows_needed >= NUM_CORES * 256 else 8
    steps_per_core = -(-rows_needed // (NUM_CORES * BLOCK_ROWS))
    R = NUM_CORES * steps_per_core * BLOCK_ROWS
    T_pad = R * LANES

    # Pad with -1e9 so padded triplets contribute relu(-1e9 + margin) = 0.
    diff_p = jnp.full((T_pad,), -1e9, jnp.float32).at[:num_t].set(diff)
    diff_p = diff_p.reshape(R, LANES)

    kernel = functools.partial(_loss_reduce_kernel,
                               margin=float(margin),
                               inv_t=1.0 / float(num_t))
    out = pl.pallas_call(
        kernel,
        out_shape=jax.ShapeDtypeStruct((NUM_CORES, 8, 128), jnp.float32),
        grid=(NUM_CORES, steps_per_core),
        in_specs=[
            pl.BlockSpec((BLOCK_ROWS, LANES),
                         lambda c, r: (c * steps_per_core + r, 0)),
        ],
        out_specs=pl.BlockSpec((1, 8, 128), lambda c, r: (c, 0, 0)),
        scratch_shapes=[pltpu.VMEM((BLOCK_ROWS, LANES), jnp.float32)],
        compiler_params=pltpu.CompilerParams(
            dimension_semantics=("parallel", "arbitrary")),
    )(diff_p)

    loss = out[:, 0, 0].sum()                    # sum of per-core partial means
    return loss, num_t


# ------------------------------ reference (JAX) --------------------------------
def _reference(embeddings, triplets, margin):
    a = embeddings[triplets[:, 0]]
    p = embeddings[triplets[:, 1]]
    n = embeddings[triplets[:, 2]]
    ap = jnp.sum((a - p) ** 2, axis=1)
    an = jnp.sum((a - n) ** 2, axis=1)
    return jnp.maximum(ap - an + margin, 0.0).mean()


if __name__ == "__main__":
    key = jax.random.PRNGKey(0)
    N, D = 8, 32                                   # batch of 8 embeddings, dim 32
    embeddings = jax.random.normal(key, (N, D), dtype=jnp.float32)
    target = np.array([0, 0, 1, 1, 2, 2, 3, 3], dtype=np.int32)

    loss, n_trip = online_triplet_loss(embeddings, target, margin=MARGIN)
    loss = jax.block_until_ready(loss)

    trip = jnp.asarray(all_triplets(target), dtype=jnp.int32)
    ref = jax.block_until_ready(_reference(embeddings, trip, MARGIN))

    assert n_trip == int(trip.shape[0])
    # bf16 MXU operands (per perf review) introduce ~0.3% relative error in the
    # Gram matrix; the tolerance reflects that while still catching structural bugs.
    np.testing.assert_allclose(np.asarray(loss), np.asarray(ref), rtol=2e-2, atol=2e-2)
    print("KERNEL_OK")
</pallas_src>

<mosaic_0001>
module attributes {stable_mosaic.version = 11 : i64} {
  func.func @_pairwise_dist_kernel(%arg0: i32, %arg1: i32, %arg2: i32, %arg3: memref<256x128xbf16, #tpu.memory_space<vmem>>, %arg4: memref<256x128xbf16, #tpu.memory_space<vmem>>, %arg5: memref<256x1xf32, #tpu.memory_space<vmem>>, %arg6: memref<1x256xf32, #tpu.memory_space<vmem>>, %arg7: memref<256x256xf32, #tpu.memory_space<vmem>>, %arg8: memref<256x256xf32, #tpu.memory_space<vmem>>) attributes {dimension_semantics = [#tpu.dimension_semantics<parallel>, #tpu.dimension_semantics<parallel>, #tpu.dimension_semantics<arbitrary>], iteration_bounds = array<i64: 1, 1, 1>, scalar_prefetch = 0 : i64, scratch_operands = 1 : i64, tpu.core_type = #tpu.core_type<tc>, window_params = [{transform_indices = @transform_0, window_bounds = array<i64: 256, 128>}, {transform_indices = @transform_1, window_bounds = array<i64: 256, 128>}, {transform_indices = @transform_2, window_bounds = array<i64: 256, 1>}, {transform_indices = @transform_3, window_bounds = array<i64: 1, 256>}, {transform_indices = @transform_4, window_bounds = array<i64: 256, 256>}]} {
    %c0_i32 = arith.constant 0 : i32
    %0 = arith.cmpi eq, %arg2, %c0_i32 : i32
    %1 = arith.extui %0 : i1 to i32
    %c0_i32_0 = arith.constant 0 : i32
    %2 = arith.cmpi ne, %1, %c0_i32_0 : i32
    scf.if %2 {
      %cst_10 = arith.constant 0.000000e+00 : f32
      %12 = vector.broadcast %cst_10 : f32 to vector<256x256xf32>
      %c0_11 = arith.constant 0 : index
      %c0_12 = arith.constant 0 : index
      %13 = vector.load %arg8[%c0_11, %c0_12] : memref<256x256xf32, #tpu.memory_space<vmem>>, vector<256x256xf32>
      tpu.vector_store %arg8[%c0_11, %c0_12], %12 {strides = array<i32>} : memref<256x256xf32, #tpu.memory_space<vmem>>, vector<256x256xf32>,
    } else {
    }
    %c0 = arith.constant 0 : index
    %c0_1 = arith.constant 0 : index
    %3 = vector.load %arg8[%c0, %c0_1] : memref<256x256xf32, #tpu.memory_space<vmem>>, vector<256x256xf32>
    %c0_2 = arith.constant 0 : index
    %c0_3 = arith.constant 0 : index
    %4 = vector.load %arg3[%c0_2, %c0_3] : memref<256x128xbf16, #tpu.memory_space<vmem>>, vector<256x128xbf16>
    %c0_4 = arith.constant 0 : index
    %c0_5 = arith.constant 0 : index
    %5 = vector.load %arg4[%c0_4, %c0_5] : memref<256x128xbf16, #tpu.memory_space<vmem>>, vector<256x128xbf16>
    %cst = arith.constant dense<0.000000e+00> : vector<256x256xf32>
    %6 = tpu.matmul %4, %5, %cst {dimension_numbers = #tpu.dot_dimension_numbers<[1], [1], [0], [0], [0, 0, 1, 0], [], []>} : vector<256x128xbf16>, vector<256x128xbf16>, vector<256x256xf32> -> vector<256x256xf32>
    %7 = arith.addf %3, %6 : vector<256x256xf32>
    %c0_6 = arith.constant 0 : index
    %c0_7 = arith.constant 0 : index
    %8 = vector.load %arg8[%c0_6, %c0_7] : memref<256x256xf32, #tpu.memory_space<vmem>>, vector<256x256xf32>
    tpu.vector_store %arg8[%c0_6, %c0_7], %7 {strides = array<i32>} : memref<256x256xf32, #tpu.memory_space<vmem>>, vector<256x256xf32>,
    %c0_i32_8 = arith.constant 0 : i32
    %9 = arith.cmpi eq, %arg2, %c0_i32_8 : i32
    %10 = arith.extui %9 : i1 to i32
    %c0_i32_9 = arith.constant 0 : i32
    %11 = arith.cmpi ne, %10, %c0_i32_9 : i32
    scf.if %11 {
      %c0_10 = arith.constant 0 : index
      %c0_11 = arith.constant 0 : index
      %12 = vector.load %arg5[%c0_10, %c0_11] : memref<256x1xf32, #tpu.memory_space<vmem>>, vector<256x1xf32>
      %c0_12 = arith.constant 0 : index
      %c0_13 = arith.constant 0 : index
      %13 = vector.load %arg6[%c0_12, %c0_13] : memref<1x256xf32, #tpu.memory_space<vmem>>, vector<1x256xf32>
      %14 = vector.broadcast %12 : vector<256x1xf32> to vector<256x256xf32>
      %15 = vector.broadcast %13 : vector<1x256xf32> to vector<256x256xf32>
      %16 = arith.addf %14, %15 : vector<256x256xf32>
      %c0_14 = arith.constant 0 : index
      %c0_15 = arith.constant 0 : index
      %17 = vector.load %arg8[%c0_14, %c0_15] : memref<256x256xf32, #tpu.memory_space<vmem>>, vector<256x256xf32>
      %cst_16 = arith.constant 2.000000e+00 : f32
      %18 = vector.broadcast %cst_16 : f32 to vector<256x256xf32>
      %19 = arith.mulf %18, %17 : vector<256x256xf32>
      %20 = arith.subf %16, %19 : vector<256x256xf32>
      %c0_17 = arith.constant 0 : index
      %c0_18 = arith.constant 0 : index
      %21 = vector.load %arg7[%c0_17, %c0_18] : memref<256x256xf32, #tpu.memory_space<vmem>>, vector<256x256xf32>
      tpu.vector_store %arg7[%c0_17, %c0_18], %20 {strides = array<i32>} : memref<256x256xf32, #tpu.memory_space<vmem>>, vector<256x256xf32>,
    } else {
    }
    return
  }
  func.func @transform_0(%arg0: i32, %arg1: i32, %arg2: i32) -> (i32, i32) {
    %c0_i32 = arith.constant 0 : i32
    return %arg0, %arg2 : i32, i32
  }
  func.func @transform_1(%arg0: i32, %arg1: i32, %arg2: i32) -> (i32, i32) {
    %c0_i32 = arith.constant 0 : i32
    return %arg1, %arg2 : i32, i32
  }
  func.func @transform_2(%arg0: i32, %arg1: i32, %arg2: i32) -> (i32, i32) {
    %c0_i32 = arith.constant 0 : i32
    %c0_i32_0 = arith.constant 0 : i32
    return %arg0, %c0_i32 : i32, i32
  }
  func.func @transform_3(%arg0: i32, %arg1: i32, %arg2: i32) -> (i32, i32) {
    %c0_i32 = arith.constant 0 : i32
    %c0_i32_0 = arith.constant 0 : i32
    return %c0_i32, %arg1 : i32, i32
  }
  func.func @transform_4(%arg0: i32, %arg1: i32, %arg2: i32) -> (i32, i32) {
    %c0_i32 = arith.constant 0 : i32
    return %arg0, %arg1 : i32, i32
  }
}

</mosaic_0001>

<bundles_post_ra>
// kernel: tpu_custom_call.1
= control target key start
LH: loop header
LB: loop body
LE: loop exit
PB: predicated region body
PF: predicated region fallthrough
CT: control target
= control target key end

     0   :  { %v1460_v4 = vmov 0   ;;  %s1811_s0 = inlined_call_operand.vmem [shape: bf16[256,128], index: 0, kind: input, shape index: {}]   ;;  %s1812_s1 = inlined_call_operand.vmem [shape: bf16[256,128], index: 1, kind: input, shape index: {}]   ;;  %s1813_s2 = inlined_call_operand.vmem [shape: f32[256,1], index: 2, kind: input, shape index: {}]   ;;  %s1814_s3 = inlined_call_operand.vmem [shape: f32[1,256], index: 3, kind: input, shape index: {}]   ;;  %s1815_s4 = inlined_call_operand.hbm [shape: f32[256,256], index: 4, kind: output, shape index: {}]  }
   0x1   :  { %v1402_v0 = vld [vmem:[%s1812_s1 + $0x38] sm:$0xff]  ;;  %v717_v2 = vld [vmem:[%s1813_s2 + $0x10] sm:$0xff]  ;;  %v715_v3 = vld [vmem:[%s1813_s2] sm:$0xff]  ;;  %1432 = vset.pattern.permute.xlu1 %v1460_v4  ;;  %1431 = vset.pattern.permute.xlu0 %v1460_v4 }
   0x2   :  { %v1410_v1 = vld [vmem:[%s1812_s1 + $0x78] sm:$0xff]  ;;  %406 = vmatpush.bf16.xpose.msra.mxu0 %v1402_v0  ;;  %1411 = vmatpush.bf16.xpose.msra.mxu2 %v1402_v0 }
   0x3   :  { %495 = vmatpush.bf16.xpose.msra.mxu1 %v1410_v1  ;;  %1419 = vmatpush.bf16.xpose.msra.mxu3 %v1410_v1 }
   0x4   :  { %9 = vsyncpa [#allocation4], 0  ;;  %760 = vperm.xlu1 %1432, %v717_v2   ;;  %750 = vperm.xlu0 %1431, %v715_v3   ;;  %v1401_v5 = vld [vmem:[%s1812_s1 + $0x30] sm:$0xff]  ;;  %v718_v7 = vld [vmem:[%s1813_s2 + $0x18] sm:$0xff]  ;;  %s1239_s13 = sshll.u32 %s1815_s4, 4  ;;  %s1462_s14 = smov 256   ;;  %s1240_s13 = int_to_ptr.hbm [resolvable:$true] %s1239_s13 }
   0x5   :  { %1433 = vset.pattern.permute.xlu2 %v1460_v4  ;;  %v1409_v6 = vld [vmem:[%s1812_s1 + $0x70] sm:$0xff]  ;;  %v716_v8 = vld [vmem:[%s1813_s2 + $0x8] sm:$0xff]  ;;  %v722_v11 = vld [vmem:[%s1813_s2 + $0x38] sm:$0xff]  ;;  %s1463_s15 = smov 16  }
   0x6   :  { %v1400_v9 = vld [vmem:[%s1812_s1 + $0x28] sm:$0xff]  ;;  %v721_v12 = vld [vmem:[%s1813_s2 + $0x30] sm:$0xff]  ;;  %v1399_v13 = vld [vmem:[%s1812_s1 + $0x20] sm:$0xff] }
   0x7   :  { %v1408_v10 = vld [vmem:[%s1812_s1 + $0x68] sm:$0xff]  ;;  %v1407_v14 = vld [vmem:[%s1812_s1 + $0x60] sm:$0xff]  ;;  %v1398_v15 = vld [vmem:[%s1812_s1 + $0x18] sm:$0xff] }
   0x8   :  { %v1406_v16 = vld [vmem:[%s1812_s1 + $0x58] sm:$0xff]  ;;  %v725_v17 = vld [vmem:[%s1813_s2 + $0x50] sm:$0xff]  ;;  %v724_v18 = vld [vmem:[%s1813_s2 + $0x48] sm:$0xff] }
   0x9   :  { %v719_v19 = vld [vmem:[%s1813_s2 + $0x20] sm:$0xff]  ;;  %v1397_v20 = vld [vmem:[%s1812_s1 + $0x10] sm:$0xff]  ;;  %v728_v22 = vld [vmem:[%s1813_s2 + $0x68] sm:$0xff] }
   0xa   :  { %407 = vmatpush.bf16.xpose.msra.mxu0 %v1401_v5  ;;  %1412 = vmatpush.bf16.xpose.msra.mxu2 %v1401_v5  ;;  %v1405_v21 = vld [vmem:[%s1812_s1 + $0x50] sm:$0xff]  ;;  %v727_v23 = vld [vmem:[%s1813_s2 + $0x60] sm:$0xff]  ;;  %v1396_v24 = vld [vmem:[%s1812_s1 + $0x8] sm:$0xff] }
   0xb   :  { %496 = vmatpush.bf16.xpose.msra.mxu1 %v1409_v6  ;;  %1420 = vmatpush.bf16.xpose.msra.mxu3 %v1409_v6  ;;  %v1404_v25 = vld [vmem:[%s1812_s1 + $0x48] sm:$0xff]  ;;  %v731_v27 = vld [vmem:[%s1813_s2 + $0x80] sm:$0xff]  ;;  %v730_v28 = vld [vmem:[%s1813_s2 + $0x78] sm:$0xff] }
   0xc   :  { %765 = vperm.xlu1 %1432, %v718_v7   ;;  %755 = vperm.xlu0 %1431, %v716_v8   ;;  %v720_v26 = vld [vmem:[%s1813_s2 + $0x28] sm:$0xff]  ;;  %v1395_v29 = vld [vmem:[%s1812_s1] sm:$0xff]  ;;  %v734_v32 = vld [vmem:[%s1813_s2 + $0x98] sm:$0xff] }
   0xd   :  { %770 = vperm.xlu2 %1433, %v719_v19   ;;  %v1403_v30 = vld [vmem:[%s1812_s1 + $0x40] sm:$0xff]  ;;  %v733_v33 = vld [vmem:[%s1813_s2 + $0x90] sm:$0xff]  ;;  %v726_v36 = vld [vmem:[%s1813_s2 + $0x58] sm:$0xff] }
   0xe   :  { %v723_v31 = vld [vmem:[%s1813_s2 + $0x40] sm:$0xff]  ;;  %v737_v37 = vld [vmem:[%s1813_s2 + $0xb0] sm:$0xff]  ;;  %v736_v38 = vld [vmem:[%s1813_s2 + $0xa8] sm:$0xff] }
   0xf   :  { %v1379_v34 = vld [vmem:[%s1811_s0] sm:$0xff]  ;;  %v729_v39 = vld [vmem:[%s1813_s2 + $0x70] sm:$0xff]  ;;  %v740_v40 = vld [vmem:[%s1813_s2 + $0xc8] sm:$0xff] }
  0x10   :  { %v1387_v35 = vld [vmem:[%s1811_s0 + $0x40] sm:$0xff]  ;;  %v1380_v42 = vld [vmem:[%s1811_s0 + $0x8] sm:$0xff]  ;;  %v742_v46 = vld [vmem:[%s1813_s2 + $0xd8] sm:$0xff] }
  0x11   :  { %v739_v41 = vld [vmem:[%s1813_s2 + $0xc0] sm:$0xff]  ;;  %v1388_v43 = vld [vmem:[%s1811_s0 + $0x48] sm:$0xff]  ;;  %v746_v47 = vld [vmem:[%s1813_s2 + $0xf8] sm:$0xff] }
  0x12   :  { %408 = vmatpush.bf16.xpose.msra.mxu0 %v1400_v9  ;;  %1413 = vmatpush.bf16.xpose.msra.mxu2 %v1400_v9  ;;  %v732_v44 = vld [vmem:[%s1813_s2 + $0x88] sm:$0xff]  ;;  %v743_v45 = vld [vmem:[%s1813_s2 + $0xe0] sm:$0xff]  ;;  %v745_v48 = vld [vmem:[%s1813_s2 + $0xf0] sm:$0xff] }
  0x13   :  { %497 = vmatpush.bf16.xpose.msra.mxu1 %v1408_v10  ;;  %1421 = vmatpush.bf16.xpose.msra.mxu3 %v1408_v10  ;;  %v1381_v49 = vld [vmem:[%s1811_s0 + $0x10] sm:$0xff]  ;;  %v735_v51 = vld [vmem:[%s1813_s2 + $0xa0] sm:$0xff]  ;;  %v738_v52 = vld [vmem:[%s1813_s2 + $0xb8] sm:$0xff] }
  0x14   :  { %785 = vperm.xlu1 %1432, %v722_v11   ;;  %780 = vperm.xlu0 %1431, %v721_v12   ;;  %v1389_v50 = vld [vmem:[%s1811_s0 + $0x50] sm:$0xff]  ;;  %v1382_v53 = vld [vmem:[%s1811_s0 + $0x18] sm:$0xff]  ;;  %v744_v56 = vld [vmem:[%s1813_s2 + $0xe8] sm:$0xff] }
  0x15   :  { %775 = vperm.xlu2 %1433, %v720_v26   ;;  %v1390_v54 = vld [vmem:[%s1811_s0 + $0x58] sm:$0xff]  ;;  %v741_v55 = vld [vmem:[%s1813_s2 + $0xd0] sm:$0xff]  ;;  %v1383_v57 = vld [vmem:[%s1811_s0 + $0x20] sm:$0xff] }
  0x16   :  { %v1391_v58 = vld [vmem:[%s1811_s0 + $0x60] sm:$0xff]  ;;  %v1384_v59 = vld [vmem:[%s1811_s0 + $0x28] sm:$0xff]  ;;  %v1385_v1 = vld [vmem:[%s1811_s0 + $0x30] sm:$0xff] }
  0x17   :  { %v1392_v60 = vld [vmem:[%s1811_s0 + $0x68] sm:$0xff]  ;;  %v1393_v2 = vld [vmem:[%s1811_s0 + $0x70] sm:$0xff]  ;;  %v1386_v9 = vld [vmem:[%s1811_s0 + $0x38] sm:$0xff] }
  0x18   :  { %v1394_v10 = vld [vmem:[%s1811_s0 + $0x78] sm:$0xff]  ;;  %s1461_s0 = smov [#allocation3]  }
  0x1a   :  { %409 = vmatpush.bf16.xpose.msra.mxu0 %v1399_v13  ;;  %1414 = vmatpush.bf16.xpose.msra.mxu2 %v1399_v13  ;;  %v747_v13 = vld [vmem:[%s1814_s3] sm:$0x3]  ;;  %s1237_s3 = sshll.u32 %s1461_s0, 4  ;;  %s1238_s3 = int_to_ptr.vmem [resolvable:$true] %s1237_s3 }
  0x1b   :  { %498 = vmatpush.bf16.xpose.msra.mxu1 %v1407_v14  ;;  %1422 = vmatpush.bf16.xpose.msra.mxu3 %v1407_v14 }
  0x1c   :  { %800 = vperm.xlu1 %1432, %v725_v17   ;;  %795 = vperm.xlu0 %1431, %v724_v18  }
  0x1d   :  { %790 = vperm.xlu2 %1433, %v723_v31  }
  0x22   :  { %410 = vmatpush.bf16.xpose.msra.mxu0 %v1398_v15  ;;  %1415 = vmatpush.bf16.xpose.msra.mxu2 %v1398_v15  ;;  %v1706_v15 = vperm.slane %v747_v13, 0 }
  0x23   :  { %499 = vmatpush.bf16.xpose.msra.mxu1 %v1406_v16  ;;  %1423 = vmatpush.bf16.xpose.msra.mxu3 %v1406_v16  ;;  %v1708_v16 = vperm.slane %v747_v13, 1 }
  0x24   :  { %815 = vperm.xlu1 %1432, %v728_v22   ;;  %810 = vperm.xlu0 %1431, %v727_v23  }
  0x25   :  { %805 = vperm.xlu2 %1433, %v726_v36  }
  0x2a   :  { %411 = vmatpush.bf16.xpose.msra.mxu0 %v1397_v20  ;;  %1416 = vmatpush.bf16.xpose.msra.mxu2 %v1397_v20 }
  0x2b   :  { %500 = vmatpush.bf16.xpose.msra.mxu1 %v1405_v21  ;;  %1424 = vmatpush.bf16.xpose.msra.mxu3 %v1405_v21 }
  0x2c   :  { %830 = vperm.xlu1 %1432, %v731_v27   ;;  %825 = vperm.xlu0 %1431, %v730_v28  }
  0x2d   :  { %820 = vperm.xlu2 %1433, %v729_v39  }
  0x32   :  { %412 = vmatpush.bf16.xpose.msra.mxu0 %v1396_v24  ;;  %1417 = vmatpush.bf16.xpose.msra.mxu2 %v1396_v24 }
  0x33   :  { %501 = vmatpush.bf16.xpose.msra.mxu1 %v1404_v25  ;;  %1425 = vmatpush.bf16.xpose.msra.mxu3 %v1404_v25 }
  0x34   :  { %845 = vperm.xlu1 %1432, %v734_v32   ;;  %840 = vperm.xlu0 %1431, %v733_v33  }
  0x35   :  { %835 = vperm.xlu2 %1433, %v732_v44  }
  0x3a   :  { %413 = vmatpush.bf16.xpose.msra.mxu0 %v1395_v29  ;;  %1418 = vmatpush.bf16.xpose.msra.mxu2 %v1395_v29 }
  0x3b   :  { %502 = vmatpush.bf16.xpose.msra.mxu1 %v1403_v30  ;;  %1426 = vmatpush.bf16.xpose.msra.mxu3 %v1403_v30 }
  0x3c   :  { %860 = vperm.xlu1 %1432, %v737_v37   ;;  %855 = vperm.xlu0 %1431, %v736_v38  }
  0x3d   :  { %850 = vperm.xlu2 %1433, %v735_v51  }
  0x41   :  { %414 = vmatmul.bf16.vlgmr.msra.gmra.mxu0 %v1379_v34  ;;  %454 = vmatmul.bf16.vlgmr.msra.gmra.mxu2 %v1387_v35 }
  0x42   :  { %503 = vmatmul.bf16.vlgmr.msra.gmra.mxu1 %v1379_v34  ;;  %543 = vmatmul.bf16.vlgmr.msra.gmra.mxu3 %v1387_v35 }
  0x44   :  { %875 = vperm.xlu1 %1432, %v740_v40   ;;  %870 = vperm.xlu0 %1431, %v739_v41  }
  0x45   :  { %865 = vperm.xlu2 %1433, %v738_v52  }
  0x4c   :  { %890 = vperm.xlu1 %1432, %v743_v45   ;;  %885 = vperm.xlu0 %1431, %v742_v46  }
  0x4d   :  { %880 = vperm.xlu2 %1433, %v741_v55  }
  0x51   :  { %419 = vmatmul.bf16.gmra.mxu0 %v1380_v42  ;;  %459 = vmatmul.bf16.gmra.mxu2 %v1388_v43 }
  0x52   :  { %508 = vmatmul.bf16.gmra.mxu1 %v1380_v42  ;;  %548 = vmatmul.bf16.gmra.mxu3 %v1388_v43 }
  0x54   :  { %905 = vperm.xlu1 %1432, %v746_v47   ;;  %900 = vperm.xlu0 %1431, %v745_v48  }
  0x55   :  { %895 = vperm.xlu2 %1433, %v744_v56  }
  0x61   :  { %424 = vmatmul.bf16.gmra.mxu0 %v1381_v49  ;;  %464 = vmatmul.bf16.gmra.mxu2 %v1389_v50 }
  0x62   :  { %513 = vmatmul.bf16.gmra.mxu1 %v1381_v49  ;;  %553 = vmatmul.bf16.gmra.mxu3 %v1389_v50 }
  0x67   :  { %v1671_v63 = vpop.permute.xlu2 %770 }
  0x6f   :  { %v1681_v4 = vpop.permute.xlu2 %775 }
  0x71   :  { %429 = vmatmul.bf16.gmra.mxu0 %v1382_v53  ;;  %469 = vmatmul.bf16.gmra.mxu2 %v1390_v54 }
  0x72   :  { %518 = vmatmul.bf16.gmra.mxu1 %v1382_v53  ;;  %558 = vmatmul.bf16.gmra.mxu3 %v1390_v54 }
  0x76   :  { %v1669_v61 = vpop.permute.xlu1 %760  ;;  %v751_v62 = vpop.permute.xlu0 %750 }
  0x77   :  { %v1687_v7 = vpop.permute.xlu2 %790  ;;  %v913_v17 = vadd.f32 %v1706_v15, %v751_v62  ;;  %v914_v19 = vadd.f32 %v1708_v16, %v751_v62  ;;  %v917_v49 = vadd.f32 %v1706_v15, %v1669_v61  ;;  %v918_v52 = vadd.f32 %v1708_v16, %v1669_v61 }
  0x7e   :  { %v1673_v0 = vpop.permute.xlu1 %765  ;;  %v756_v3 = vpop.permute.xlu0 %755 }
  0x7f   :  { %v1699_v12 = vpop.permute.xlu2 %805  ;;  %v915_v31 = vadd.f32 %v1706_v15, %v756_v3  ;;  %v916_v34 = vadd.f32 %v1708_v16, %v756_v3  ;;  %v919_v61 = vadd.f32 %v1706_v15, %v1673_v0 }
  0x81   :  { %434 = vmatmul.bf16.gmra.mxu0 %v1383_v57  ;;  %474 = vmatmul.bf16.gmra.mxu2 %v1391_v58 }
  0x82   :  { %523 = vmatmul.bf16.gmra.mxu1 %v1383_v57  ;;  %563 = vmatmul.bf16.gmra.mxu3 %v1391_v58 }
  0x86   :  { %v1683_v5 = vpop.permute.xlu1 %785  ;;  %v1685_v6 = vpop.permute.xlu0 %780 }
  0x87   :  { %v1714_v21 = vpop.permute.xlu2 %820 }
  0x8e   :  { %v1689_v8 = vpop.permute.xlu1 %800  ;;  %v1697_v11 = vpop.permute.xlu0 %795 }
  0x8f   :  { %v836_v43 = vpop.permute.xlu2 %835 }
  0x90   :  { %v947_v46 = vadd.f32 %v1706_v15, %v836_v43  ;;  %v948_v47 = vadd.f32 %v1708_v16, %v836_v43 }
  0x91   :  { %439 = vmatmul.bf16.gmra.mxu0 %v1384_v59  ;;  %479 = vmatmul.bf16.gmra.mxu2 %v1392_v60 }
  0x92   :  { %528 = vmatmul.bf16.gmra.mxu1 %v1384_v59  ;;  %568 = vmatmul.bf16.gmra.mxu3 %v1392_v60 }
  0x96   :  { %v1704_v14 = vpop.permute.xlu1 %815  ;;  %v1711_v18 = vpop.permute.xlu0 %810 }
  0x9e   :  { %v831_v25 = vpop.permute.xlu1 %830  ;;  %v1720_v40 = vpop.permute.xlu0 %825 }
  0x9f   :  { %v945_v28 = vadd.f32 %v1706_v15, %v831_v25  ;;  %v946_v29 = vadd.f32 %v1708_v16, %v831_v25 }
  0xa1   :  { %444 = vmatmul.bf16.gmra.mxu0 %v1385_v1  ;;  %484 = vmatmul.bf16.gmra.mxu2 %v1393_v2 }
  0xa2   :  { %533 = vmatmul.bf16.gmra.mxu1 %v1385_v1  ;;  %573 = vmatmul.bf16.gmra.mxu3 %v1393_v2 }
  0xa6   :  { %v841_v62 = vpop.permute.xlu0 %840 }
  0xa7   :  { %v949_v2 = vadd.f32 %v1706_v15, %v841_v62  ;;  %v950_v3 = vadd.f32 %v1708_v16, %v841_v62 }
  0xae   :  { %v856_v62 = vpop.permute.xlu0 %855 }
  0xb1   :  { %449 = vmatmul.bf16.gmra.mxu0 %v1386_v9  ;;  %489 = vmatmul.bf16.gmra.mxu2 %v1394_v10 }
  0xb2   :  { %538 = vmatmul.bf16.gmra.mxu1 %v1386_v9  ;;  %578 = vmatmul.bf16.gmra.mxu3 %v1394_v10 }
  0xbe   :  { %v415_v20 = vpop.f32.mrf.mxu0 }
  0xbf   :  { %v1041_v22 = vmul.f32 2.0, %v415_v20  ;;  %v504_v23 = vpop.f32.mrf.mxu1 }
  0xc0   :  { %v1042_v24 = vmul.f32 2.0, %v504_v23 }
  0xc1   :  { %v1105_v26 = vsub.f32 %v913_v17, %v1041_v22  ;;  %v920_v17 = vadd.f32 %v1708_v16, %v1673_v0  ;;  %v921_v0 = vadd.f32 %v1706_v15, %v1671_v63 }
  0xc2   :  { %v1106_v27 = vsub.f32 %v914_v19, %v1042_v24 }
  0xc3   :  { %1169 = vst [vmem:[#allocation3] sm:$0xff] %v1105_v26 }
  0xc4   :  { %1170 = vst [vmem:[#allocation3 + $0x8] sm:$0xff] %v1106_v27  ;;  %v455_v30 = vpop.f32.mrf.mxu2 }
  0xc5   :  { %v1073_v32 = vmul.f32 2.0, %v455_v30  ;;  %v544_v33 = vpop.f32.mrf.mxu3 }
  0xc6   :  { %v1074_v35 = vmul.f32 2.0, %v544_v33  ;;  %v417_v36 = vpop.f32.mrf.mxu0 }
  0xc7   :  { %v1137_v37 = vsub.f32 %v945_v28, %v1073_v32  ;;  %v1043_v38 = vmul.f32 2.0, %v417_v36  ;;  %v506_v39 = vpop.f32.mrf.mxu1  ;;  %v846_v28 = vpop.permute.xlu1 %845 }
  0xc8   :  { %v1138_v41 = vsub.f32 %v946_v29, %v1074_v35  ;;  %v1044_v42 = vmul.f32 2.0, %v506_v39  ;;  %v951_v30 = vadd.f32 %v1706_v15, %v846_v28  ;;  %v922_v35 = vadd.f32 %v1708_v16, %v1671_v63 }
  0xc9   :  { %1201 = vst [vmem:[#allocation3 + $0x100] sm:$0xff] %v1137_v37  ;;  %v1107_v44 = vsub.f32 %v915_v31, %v1043_v38  ;;  %v952_v31 = vadd.f32 %v1708_v16, %v846_v28  ;;  %v923_v63 = vadd.f32 %v1706_v15, %v1681_v4 }
  0xca   :  { %1202 = vst [vmem:[#allocation3 + $0x108] sm:$0xff] %v1138_v41  ;;  %v1108_v45 = vsub.f32 %v916_v34, %v1044_v42 }
  0xcb   :  { %1171 = vst [vmem:[#allocation3 + $0x10] sm:$0xff] %v1107_v44 }
  0xcc   :  { %1172 = vst [vmem:[#allocation3 + $0x18] sm:$0xff] %v1108_v45  ;;  %v457_v48 = vpop.f32.mrf.mxu2  ;;  %v851_v45 = vpop.permute.xlu2 %850 }
  0xcd   :  { %v1075_v50 = vmul.f32 2.0, %v457_v48  ;;  %v546_v51 = vpop.f32.mrf.mxu3  ;;  %v954_v48 = vadd.f32 %v1708_v16, %v851_v45 }
  0xce   :  { %v1076_v53 = vmul.f32 2.0, %v546_v51  ;;  %v420_v54 = vpop.f32.mrf.mxu0 }
  0xcf   :  { %v1139_v55 = vsub.f32 %v947_v46, %v1075_v50  ;;  %v1045_v56 = vmul.f32 2.0, %v420_v54  ;;  %v509_v57 = vpop.f32.mrf.mxu1  ;;  %v861_v28 = vpop.permute.xlu1 %860 }
  0xd0   :  { %v1140_v58 = vsub.f32 %v948_v47, %v1076_v53  ;;  %v1046_v59 = vmul.f32 2.0, %v509_v57  ;;  %v953_v47 = vadd.f32 %v1706_v15, %v851_v45 }
  0xd1   :  { %1203 = vst [vmem:[#allocation3 + $0x110] sm:$0xff] %v1139_v55  ;;  %v1109_v60 = vsub.f32 %v917_v49, %v1045_v56 }
  0xd2   :  { %1204 = vst [vmem:[#allocation3 + $0x118] sm:$0xff] %v1140_v58  ;;  %v1110_v1 = vsub.f32 %v918_v52, %v1046_v59  ;;  %v924_v52 = vadd.f32 %v1708_v16, %v1681_v4 }
  0xd3   :  { %1173 = vst [vmem:[#allocation3 + $0x20] sm:$0xff] %v1109_v60 }
  0xd4   :  { %1174 = vst [vmem:[#allocation3 + $0x28] sm:$0xff] %v1110_v1  ;;  %v460_v9 = vpop.f32.mrf.mxu2 }
  0xd5   :  { %v1077_v10 = vmul.f32 2.0, %v460_v9  ;;  %v549_v13 = vpop.f32.mrf.mxu3 }
  0xd6   :  { %v1078_v19 = vmul.f32 2.0, %v549_v13  ;;  %v422_v20 = vpop.f32.mrf.mxu0 }
  0xd7   :  { %v1141_v22 = vsub.f32 %v949_v2, %v1077_v10  ;;  %v1047_v23 = vmul.f32 2.0, %v422_v20  ;;  %v511_v24 = vpop.f32.mrf.mxu1  ;;  %v955_v2 = vadd.f32 %v1706_v15, %v856_v62 }
  0xd8   :  { %v1142_v25 = vsub.f32 %v950_v3, %v1078_v19  ;;  %v1048_v26 = vmul.f32 2.0, %v511_v24  ;;  %v956_v3 = vadd.f32 %v1708_v16, %v856_v62 }
  0xd9   :  { %1205 = vst [vmem:[#allocation3 + $0x120] sm:$0xff] %v1141_v22  ;;  %v1111_v27 = vsub.f32 %v919_v61, %v1047_v23  ;;  %v926_v23 = vadd.f32 %v1708_v16, %v1685_v6 }
  0xda   :  { %1206 = vst [vmem:[#allocation3 + $0x128] sm:$0xff] %v1142_v25  ;;  %v1112_v29 = vsub.f32 %v920_v17, %v1048_v26  ;;  %v925_v17 = vadd.f32 %v1706_v15, %v1685_v6  ;;  %v927_v6 = vadd.f32 %v1706_v15, %v1683_v5 }
  0xdb   :  { %1175 = vst [vmem:[#allocation3 + $0x30] sm:$0xff] %v1111_v27 }
  0xdc   :  { %1176 = vst [vmem:[#allocation3 + $0x38] sm:$0xff] %v1112_v29  ;;  %v462_v32 = vpop.f32.mrf.mxu2 }
  0xdd   :  { %v1079_v33 = vmul.f32 2.0, %v462_v32  ;;  %v551_v34 = vpop.f32.mrf.mxu3 }
  0xde   :  { %v1080_v36 = vmul.f32 2.0, %v551_v34  ;;  %v425_v37 = vpop.f32.mrf.mxu0 }
  0xdf   :  { %v1143_v38 = vsub.f32 %v951_v30, %v1079_v33  ;;  %v1049_v39 = vmul.f32 2.0, %v425_v37  ;;  %v514_v41 = vpop.f32.mrf.mxu1  ;;  %v957_v30 = vadd.f32 %v1706_v15, %v861_v28 }
  0xe0   :  { %v1144_v42 = vsub.f32 %v952_v31, %v1080_v36  ;;  %v1050_v43 = vmul.f32 2.0, %v514_v41 }
  0xe1   :  { %1207 = vst [vmem:[#allocation3 + $0x130] sm:$0xff] %v1143_v38  ;;  %v1113_v44 = vsub.f32 %v921_v0, %v1049_v39  ;;  %v958_v0 = vadd.f32 %v1708_v16, %v861_v28  ;;  %v928_v38 = vadd.f32 %v1708_v16, %v1683_v5  ;;  %v929_v5 = vadd.f32 %v1706_v15, %v1687_v7 }
  0xe2   :  { %1208 = vst [vmem:[#allocation3 + $0x138] sm:$0xff] %v1144_v42  ;;  %v1114_v46 = vsub.f32 %v922_v35, %v1050_v43 }
  0xe3   :  { %1177 = vst [vmem:[#allocation3 + $0x40] sm:$0xff] %v1113_v44  ;;  %v866_v44 = vpop.permute.xlu2 %865 }
  0xe4   :  { %1178 = vst [vmem:[#allocation3 + $0x48] sm:$0xff] %v1114_v46  ;;  %v465_v49 = vpop.f32.mrf.mxu2  ;;  %v959_v46 = vadd.f32 %v1706_v15, %v866_v44 }
  0xe5   :  { %v1081_v50 = vmul.f32 2.0, %v465_v49  ;;  %v554_v51 = vpop.f32.mrf.mxu3  ;;  %v960_v49 = vadd.f32 %v1708_v16, %v866_v44 }
  0xe6   :  { %v1082_v53 = vmul.f32 2.0, %v554_v51  ;;  %v427_v54 = vpop.f32.mrf.mxu0 }
  0xe7   :  { %v1145_v55 = vsub.f32 %v953_v47, %v1081_v50  ;;  %v1051_v56 = vmul.f32 2.0, %v427_v54  ;;  %v516_v57 = vpop.f32.mrf.mxu1  ;;  %v930_v54 = vadd.f32 %v1708_v16, %v1687_v7  ;;  %v931_v7 = vadd.f32 %v1706_v15, %v1697_v11 }
  0xe8   :  { %v1146_v58 = vsub.f32 %v954_v48, %v1082_v53  ;;  %v1052_v59 = vmul.f32 2.0, %v516_v57 }
  0xe9   :  { %1209 = vst [vmem:[#allocation3 + $0x140] sm:$0xff] %v1145_v55  ;;  %v1115_v60 = vsub.f32 %v923_v63, %v1051_v56 }
  0xea   :  { %1210 = vst [vmem:[#allocation3 + $0x148] sm:$0xff] %v1146_v58  ;;  %v1116_v1 = vsub.f32 %v924_v52, %v1052_v59  ;;  %v871_v59 = vpop.permute.xlu0 %870 }
  0xeb   :  { %1179 = vst [vmem:[#allocation3 + $0x50] sm:$0xff] %v1115_v60  ;;  %v961_v62 = vadd.f32 %v1706_v15, %v871_v59 }
  0xec   :  { %1180 = vst [vmem:[#allocation3 + $0x58] sm:$0xff] %v1116_v1  ;;  %v467_v9 = vpop.f32.mrf.mxu2 }
  0xed   :  { %v1083_v4 = vmul.f32 2.0, %v467_v9  ;;  %v556_v61 = vpop.f32.mrf.mxu3 }
  0xee   :  { %v1084_v10 = vmul.f32 2.0, %v556_v61  ;;  %v430_v13 = vpop.f32.mrf.mxu0 }
  0xef   :  { %v1147_v19 = vsub.f32 %v955_v2, %v1083_v4  ;;  %v1053_v20 = vmul.f32 2.0, %v430_v13  ;;  %v519_v22 = vpop.f32.mrf.mxu1 }
  0xf0   :  { %v1148_v24 = vsub.f32 %v956_v3, %v1084_v10  ;;  %v1054_v25 = vmul.f32 2.0, %v519_v22  ;;  %v962_v3 = vadd.f32 %v1708_v16, %v871_v59 }
  0xf1   :  { %1211 = vst [vmem:[#allocation3 + $0x150] sm:$0xff] %v1147_v19  ;;  %v1117_v26 = vsub.f32 %v925_v17, %v1053_v20  ;;  %v932_v17 = vadd.f32 %v1708_v16, %v1697_v11  ;;  %v933_v11 = vadd.f32 %v1706_v15, %v1689_v8 }
  0xf2   :  { %1212 = vst [vmem:[#allocation3 + $0x158] sm:$0xff] %v1148_v24  ;;  %v1118_v27 = vsub.f32 %v926_v23, %v1054_v25  ;;  %v876_v24 = vpop.permute.xlu1 %875 }
  0xf3   :  { %1181 = vst [vmem:[#allocation3 + $0x60] sm:$0xff] %v1117_v26  ;;  %v963_v26 = vadd.f32 %v1706_v15, %v876_v24 }
  0xf4   :  { %1182 = vst [vmem:[#allocation3 + $0x68] sm:$0xff] %v1118_v27  ;;  %v470_v29 = vpop.f32.mrf.mxu2 }
  0xf5   :  { %v1085_v31 = vmul.f32 2.0, %v470_v29  ;;  %v559_v32 = vpop.f32.mrf.mxu3  ;;  %v964_v29 = vadd.f32 %v1708_v16, %v876_v24 }
  0xf6   :  { %v1086_v33 = vmul.f32 2.0, %v559_v32  ;;  %v432_v34 = vpop.f32.mrf.mxu0 }
  0xf7   :  { %v1149_v35 = vsub.f32 %v957_v30, %v1085_v31  ;;  %v1055_v36 = vmul.f32 2.0, %v432_v34  ;;  %v521_v37 = vpop.f32.mrf.mxu1  ;;  %v934_v34 = vadd.f32 %v1708_v16, %v1689_v8  ;;  %v935_v8 = vadd.f32 %v1706_v15, %v1699_v12 }
  0xf8   :  { %v1150_v39 = vsub.f32 %v958_v0, %v1086_v33  ;;  %v1056_v41 = vmul.f32 2.0, %v521_v37 }
  0xf9   :  { %1213 = vst [vmem:[#allocation3 + $0x160] sm:$0xff] %v1149_v35  ;;  %v1119_v42 = vsub.f32 %v927_v6, %v1055_v36 }
  0xfa   :  { %1214 = vst [vmem:[#allocation3 + $0x168] sm:$0xff] %v1150_v39  ;;  %v1120_v43 = vsub.f32 %v928_v38, %v1056_v41  ;;  %v881_v38 = vpop.permute.xlu2 %880 }
  0xfb   :  { %1183 = vst [vmem:[#allocation3 + $0x70] sm:$0xff] %v1119_v42  ;;  %v965_v41 = vadd.f32 %v1706_v15, %v881_v38  ;;  %v966_v44 = vadd.f32 %v1708_v16, %v881_v38 }
  0xfc   :  { %1184 = vst [vmem:[#allocation3 + $0x78] sm:$0xff] %v1120_v43  ;;  %v472_v45 = vpop.f32.mrf.mxu2 }
  0xfd   :  { %v1087_v47 = vmul.f32 2.0, %v472_v45  ;;  %v561_v48 = vpop.f32.mrf.mxu3 }
  0xfe   :  { %v1088_v63 = vmul.f32 2.0, %v561_v48  ;;  %v435_v50 = vpop.f32.mrf.mxu0 }
  0xff   :  { %v1151_v51 = vsub.f32 %v959_v46, %v1087_v47  ;;  %v1057_v52 = vmul.f32 2.0, %v435_v50  ;;  %v524_v53 = vpop.f32.mrf.mxu1 }
 0x100   :  { %v1152_v55 = vsub.f32 %v960_v49, %v1088_v63  ;;  %v1058_v56 = vmul.f32 2.0, %v524_v53  ;;  %v936_v63 = vadd.f32 %v1708_v16, %v1699_v12  ;;  %v886_v53 = vpop.permute.xlu0 %885  ;;  %v937_v12 = vadd.f32 %v1706_v15, %v1711_v18 }
 0x101   :  { %1215 = vst [vmem:[#allocation3 + $0x170] sm:$0xff] %v1151_v51  ;;  %v1121_v57 = vsub.f32 %v929_v5, %v1057_v52 }
 0x102   :  { %1216 = vst [vmem:[#allocation3 + $0x178] sm:$0xff] %v1152_v55  ;;  %v1122_v58 = vsub.f32 %v930_v54, %v1058_v56  ;;  %v967_v55 = vadd.f32 %v1706_v15, %v886_v53 }
 0x103   :  { %1185 = vst [vmem:[#allocation3 + $0x80] sm:$0xff] %v1121_v57 }
 0x104   :  { %1186 = vst [vmem:[#allocation3 + $0x88] sm:$0xff] %v1122_v58  ;;  %v475_v60 = vpop.f32.mrf.mxu2  ;;  %v968_v58 = vadd.f32 %v1708_v16, %v886_v53 }
 0x105   :  { %v1089_v1 = vmul.f32 2.0, %v475_v60  ;;  %v564_v2 = vpop.f32.mrf.mxu3 }
 0x106   :  { %v1090_v9 = vmul.f32 2.0, %v564_v2  ;;  %v437_v4 = vpop.f32.mrf.mxu0 }
 0x107   :  { %v1153_v61 = vsub.f32 %v961_v62, %v1089_v1  ;;  %v1059_v10 = vmul.f32 2.0, %v437_v4  ;;  %v526_v13 = vpop.f32.mrf.mxu1 }
 0x108   :  { %v1154_v19 = vsub.f32 %v962_v3, %v1090_v9  ;;  %v1060_v20 = vmul.f32 2.0, %v526_v13  ;;  %v938_v3 = vadd.f32 %v1708_v16, %v1711_v18  ;;  %v939_v18 = vadd.f32 %v1706_v15, %v1704_v14 }
 0x109   :  { %1217 = vst [vmem:[#allocation3 + $0x180] sm:$0xff] %v1153_v61  ;;  %v1123_v22 = vsub.f32 %v931_v7, %v1059_v10  ;;  %v891_v10 = vpop.permute.xlu1 %890 }
 0x10a   :  { %1218 = vst [vmem:[#allocation3 + $0x188] sm:$0xff] %v1154_v19  ;;  %v1124_v23 = vsub.f32 %v932_v17, %v1060_v20  ;;  %v969_v17 = vadd.f32 %v1706_v15, %v891_v10 }
 0x10b   :  { %1187 = vst [vmem:[#allocation3 + $0x90] sm:$0xff] %v1123_v22  ;;  %v970_v22 = vadd.f32 %v1708_v16, %v891_v10 }
 0x10c   :  { %1188 = vst [vmem:[#allocation3 + $0x98] sm:$0xff] %v1124_v23  ;;  %v477_v25 = vpop.f32.mrf.mxu2 }
 0x10d   :  { %v1091_v27 = vmul.f32 2.0, %v477_v25  ;;  %v566_v28 = vpop.f32.mrf.mxu3 }
 0x10e   :  { %v1092_v30 = vmul.f32 2.0, %v566_v28  ;;  %v440_v31 = vpop.f32.mrf.mxu0  ;;  %v940_v28 = vadd.f32 %v1708_v16, %v1704_v14  ;;  %v941_v14 = vadd.f32 %v1706_v15, %v1714_v21 }
 0x10f   :  { %v1155_v32 = vsub.f32 %v963_v26, %v1091_v27  ;;  %v1061_v0 = vmul.f32 2.0, %v440_v31  ;;  %v529_v33 = vpop.f32.mrf.mxu1 }
 0x110   :  { %v1156_v6 = vsub.f32 %v964_v29, %v1092_v30  ;;  %v1062_v35 = vmul.f32 2.0, %v529_v33 }
 0x111   :  { %1219 = vst [vmem:[#allocation3 + $0x190] sm:$0xff] %v1155_v32  ;;  %v1125_v36 = vsub.f32 %v933_v11, %v1061_v0  ;;  %v896_v11 = vpop.permute.xlu2 %895 }
 0x112   :  { %1220 = vst [vmem:[#allocation3 + $0x198] sm:$0xff] %v1156_v6  ;;  %v1126_v37 = vsub.f32 %v934_v34, %v1062_v35  ;;  %v971_v33 = vadd.f32 %v1706_v15, %v896_v11  ;;  %v972_v35 = vadd.f32 %v1708_v16, %v896_v11 }
 0x113   :  { %1189 = vst [vmem:[#allocation3 + $0xa0] sm:$0xff] %v1125_v36 }
 0x114   :  { %1190 = vst [vmem:[#allocation3 + $0xa8] sm:$0xff] %v1126_v37  ;;  %v480_v39 = vpop.f32.mrf.mxu2 }
 0x115   :  { %v1093_v42 = vmul.f32 2.0, %v480_v39  ;;  %v569_v43 = vpop.f32.mrf.mxu3 }
 0x116   :  { %v1094_v45 = vmul.f32 2.0, %v569_v43  ;;  %v442_v46 = vpop.f32.mrf.mxu0 }
 0x117   :  { %v1157_v47 = vsub.f32 %v965_v41, %v1093_v42  ;;  %v1063_v48 = vmul.f32 2.0, %v442_v46  ;;  %v531_v49 = vpop.f32.mrf.mxu1  ;;  %v942_v42 = vadd.f32 %v1708_v16, %v1714_v21  ;;  %v901_v46 = vpop.permute.xlu0 %900  ;;  %v943_v21 = vadd.f32 %v1706_v15, %v1720_v40 }
 0x118   :  { %v1158_v50 = vsub.f32 %v966_v44, %v1094_v45  ;;  %v1064_v5 = vmul.f32 2.0, %v531_v49 }
 0x119   :  { %1221 = vst [vmem:[#allocation3 + $0x1a0] sm:$0xff] %v1157_v47  ;;  %v1127_v51 = vsub.f32 %v935_v8, %v1063_v48  ;;  %v973_v48 = vadd.f32 %v1706_v15, %v901_v46 }
 0x11a   :  { %1222 = vst [vmem:[#allocation3 + $0x1a8] sm:$0xff] %v1158_v50  ;;  %v1128_v52 = vsub.f32 %v936_v63, %v1064_v5  ;;  %v974_v50 = vadd.f32 %v1708_v16, %v901_v46 }
 0x11b   :  { %1191 = vst [vmem:[#allocation3 + $0xb0] sm:$0xff] %v1127_v51 }
 0x11c   :  { %1192 = vst [vmem:[#allocation3 + $0xb8] sm:$0xff] %v1128_v52  ;;  %v482_v54 = vpop.f32.mrf.mxu2 }
 0x11d   :  { %v1095_v56 = vmul.f32 2.0, %v482_v54  ;;  %v571_v57 = vpop.f32.mrf.mxu3 }
 0x11e   :  { %v1096_v59 = vmul.f32 2.0, %v571_v57  ;;  %v445_v60 = vpop.f32.mrf.mxu0 }
 0x11f   :  { %v1159_v62 = vsub.f32 %v967_v55, %v1095_v56  ;;  %v1065_v1 = vmul.f32 2.0, %v445_v60  ;;  %v534_v2 = vpop.f32.mrf.mxu1  ;;  %v944_v55 = vadd.f32 %v1708_v16, %v1720_v40 }
 0x120   :  { %v1160_v9 = vsub.f32 %v968_v58, %v1096_v59  ;;  %v1066_v4 = vmul.f32 2.0, %v534_v2  ;;  %v906_v59 = vpop.permute.xlu1 %905 }
 0x121   :  { %1223 = vst [vmem:[#allocation3 + $0x1b0] sm:$0xff] %v1159_v62  ;;  %v1129_v7 = vsub.f32 %v937_v12, %v1065_v1  ;;  %v975_v62 = vadd.f32 %v1706_v15, %v906_v59  ;;  %v976_v2 = vadd.f32 %v1708_v16, %v906_v59 }
 0x122   :  { %1224 = vst [vmem:[#allocation3 + $0x1b8] sm:$0xff] %v1160_v9  ;;  %v1130_v61 = vsub.f32 %v938_v3, %v1066_v4 }
 0x123   :  { %1193 = vst [vmem:[#allocation3 + $0xc0] sm:$0xff] %v1129_v7 }
 0x124   :  { %1194 = vst [vmem:[#allocation3 + $0xc8] sm:$0xff] %v1130_v61  ;;  %v485_v13 = vpop.f32.mrf.mxu2 }
 0x125   :  { %v1097_v19 = vmul.f32 2.0, %v485_v13  ;;  %v574_v20 = vpop.f32.mrf.mxu3 }
 0x126   :  { %v1098_v23 = vmul.f32 2.0, %v574_v20  ;;  %v447_v24 = vpop.f32.mrf.mxu0 }
 0x127   :  { %v1161_v25 = vsub.f32 %v969_v17, %v1097_v19  ;;  %v1067_v26 = vmul.f32 2.0, %v447_v24  ;;  %v536_v27 = vpop.f32.mrf.mxu1 }
 0x128   :  { %v1162_v29 = vsub.f32 %v970_v22, %v1098_v23  ;;  %v1068_v30 = vmul.f32 2.0, %v536_v27 }
 0x129   :  { %1225 = vst [vmem:[#allocation3 + $0x1c0] sm:$0xff] %v1161_v25  ;;  %v1131_v31 = vsub.f32 %v939_v18, %v1067_v26 }
 0x12a   :  { %1226 = vst [vmem:[#allocation3 + $0x1c8] sm:$0xff] %v1162_v29  ;;  %v1132_v32 = vsub.f32 %v940_v28, %v1068_v30 }
 0x12b   :  { %1195 = vst [vmem:[#allocation3 + $0xd0] sm:$0xff] %v1131_v31 }
 0x12c   :  { %1196 = vst [vmem:[#allocation3 + $0xd8] sm:$0xff] %v1132_v32  ;;  %v487_v0 = vpop.f32.mrf.mxu2 }
 0x12d   :  { %v1099_v34 = vmul.f32 2.0, %v487_v0  ;;  %v576_v6 = vpop.f32.mrf.mxu3 }
 0x12e   :  { %v1100_v36 = vmul.f32 2.0, %v576_v6  ;;  %v450_v37 = vpop.f32.mrf.mxu0 }
 0x12f   :  { %v1163_v38 = vsub.f32 %v971_v33, %v1099_v34  ;;  %v1069_v39 = vmul.f32 2.0, %v450_v37  ;;  %v539_v41 = vpop.f32.mrf.mxu1 }
 0x130   :  { %v1164_v43 = vsub.f32 %v972_v35, %v1100_v36  ;;  %v1070_v44 = vmul.f32 2.0, %v539_v41 }
 0x131   :  { %1227 = vst [vmem:[#allocation3 + $0x1d0] sm:$0xff] %v1163_v38  ;;  %v1133_v45 = vsub.f32 %v941_v14, %v1069_v39 }
 0x132   :  { %1228 = vst [vmem:[#allocation3 + $0x1d8] sm:$0xff] %v1164_v43  ;;  %v1134_v8 = vsub.f32 %v942_v42, %v1070_v44 }
 0x133   :  { %1197 = vst [vmem:[#allocation3 + $0xe0] sm:$0xff] %v1133_v45 }
 0x134   :  { %1198 = vst [vmem:[#allocation3 + $0xe8] sm:$0xff] %v1134_v8  ;;  %v490_v47 = vpop.f32.mrf.mxu2 }
 0x135   :  { %v1101_v49 = vmul.f32 2.0, %v490_v47  ;;  %v579_v63 = vpop.f32.mrf.mxu3 }
 0x136   :  { %v1102_v5 = vmul.f32 2.0, %v579_v63  ;;  %v452_v51 = vpop.f32.mrf.mxu0 }
 0x137   :  { %v1165_v52 = vsub.f32 %v973_v48, %v1101_v49  ;;  %v1071_v53 = vmul.f32 2.0, %v452_v51  ;;  %v541_v54 = vpop.f32.mrf.mxu1 }
 0x138   :  { %v1166_v56 = vsub.f32 %v974_v50, %v1102_v5  ;;  %v1072_v57 = vmul.f32 2.0, %v541_v54 }
 0x139   :  { %1229 = vst [vmem:[#allocation3 + $0x1e0] sm:$0xff] %v1165_v52  ;;  %v1135_v58 = vsub.f32 %v943_v21, %v1071_v53 }
 0x13a   :  { %1230 = vst [vmem:[#allocation3 + $0x1e8] sm:$0xff] %v1166_v56  ;;  %v1136_v60 = vsub.f32 %v944_v55, %v1072_v57 }
 0x13b   :  { %1199 = vst [vmem:[#allocation3 + $0xf0] sm:$0xff] %v1135_v58 }
 0x13c   :  { %1200 = vst [vmem:[#allocation3 + $0xf8] sm:$0xff] %v1136_v60  ;;  %v492_v12 = vpop.f32.mrf.mxu2 }
 0x13d   :  { %v1103_v1 = vmul.f32 2.0, %v492_v12  ;;  %v581_v40 = vpop.f32.mrf.mxu3 }
 0x13e   :  { %v1104_v3 = vmul.f32 2.0, %v581_v40 }
 0x13f   :  { %v1167_v9 = vsub.f32 %v975_v62, %v1103_v1 }
 0x140   :  { %v1168_v4 = vsub.f32 %v976_v2, %v1104_v3 }
 0x141   :  { %1231 = vst [vmem:[#allocation3 + $0x1f0] sm:$0xff] %v1167_v9 }
 0x142   :  { %1232 = vst [vmem:[#allocation3 + $0x1f8] sm:$0xff] %v1168_v4 }
 0x143   :  { %1245 = dma.vmem_to_hbm [thread:$0]  %s1238_s3, 8192, %s1240_s13, [#allocation4], %s1462_s14, %s1462_s14, %s1463_s15  }
 0x144   :  { %1458 = dma.done.wait [#allocation4], 8192  }
 0x145   :  { %1459 = vsyncadd [#allocation4], 4294959104 }
 0x146   :  { %1250 = vsyncpa [#allocation4], 1 }

</bundles_post_ra>
